<compile_context>
chip_gen: v6e
topology: v6e:2x2x1
jax: 0.10.0
libtpu: 0.0.40
codegen_flags: <defaults>
</compile_context>

<pallas_src>
import jax
import jax.numpy as jnp
import numpy as np
from jax.experimental import pallas as pl
from jax.experimental.pallas import tpu as pltpu


# ----------------------------- Pallas kernel ------------------------------

def _linear_bias_kernel(x_ref, w_ref, b_ref, o_ref):
    # x_ref: (TM, T) bf16   w_ref: (T, TD) bf16   b_ref: (1, TD) f32   o_ref: (TM, TD) f32
    acc = jnp.dot(x_ref[...], w_ref[...], preferred_element_type=jnp.float32)
    o_ref[...] = (acc + b_ref[...]).astype(o_ref.dtype)


# ----------------------------- wrapper ------------------------------

def _round_up(n, m):
    return ((n + m - 1) // m) * m


def variates_embedding(x, x_time, weight, bias, *,
                       compute_dtype=jnp.bfloat16,
                       row_block=512, col_block=512):
    """VariatesEmbedding.forward (eval mode).

    x:      (B, T, N)  float32
    x_time: (B, T, Fm) float32 or None
    weight: (T, D)     float32  (== torch Linear.weight.T, c_in = T = seq_len)
    bias:   (D,)       float32
    returns (B, N [+ Fm], D) float32
    """
    B, T, N = x.shape
    assert weight.ndim == 2 and weight.shape[0] == T, (
        f"weight must be (T={T}, D), got {weight.shape} (expected torch Linear.weight.T)")
    D = weight.shape[1]
    assert bias.shape == (D,), f"bias must be ({D},), got {bias.shape}"

    # ---- layout plumbing (XLA): permute + concat + flatten to one (M, T) matmul LHS ----
    xv = jnp.transpose(x, (0, 2, 1))                                  # (B, N, T)
    if x_time is not None:
        assert x_time.shape[0] == B and x_time.shape[1] == T, (
            f"x_time must be (B={B}, T={T}, Fm), got {x_time.shape}")
        xv = jnp.concatenate([xv, jnp.transpose(x_time, (0, 2, 1))], axis=1)
    V = xv.shape[1]                                                   # N (+ Fm)
    M = B * V
    xm = xv.reshape(M, T).astype(compute_dtype)                       # (M, T) bf16

    # ---- blocking / padding: lane-dense D, sublane-aligned rows ----
    D_pad = _round_up(D, 128)
    TD = min(col_block, D_pad)
    while D_pad % TD != 0:          # TD stays a multiple of 128, divides D_pad
        TD -= 128
    TM = min(row_block, _round_up(M, 8))
    M_pad = _round_up(M, TM)

    if M_pad != M:
        xm = jnp.pad(xm, ((0, M_pad - M), (0, 0)))
    w = weight.astype(compute_dtype)
    b2 = bias.reshape(1, D).astype(jnp.float32)
    if D_pad != D:
        w = jnp.pad(w, ((0, 0), (0, D_pad - D)))
        b2 = jnp.pad(b2, ((0, 0), (0, D_pad - D)))

    grid = (M_pad // TM, D_pad // TD)

    out = pl.pallas_call(
        _linear_bias_kernel,
        out_shape=jax.ShapeDtypeStruct((M_pad, D_pad), jnp.float32),
        grid=grid,
        in_specs=[
            pl.BlockSpec((TM, T), lambda i, j: (i, 0)),     # full K per block
            pl.BlockSpec((T, TD), lambda i, j: (0, j)),
            pl.BlockSpec((1, TD), lambda i, j: (0, j)),
        ],
        out_specs=pl.BlockSpec((TM, TD), lambda i, j: (i, j)),
        compiler_params=pltpu.CompilerParams(
            dimension_semantics=("parallel", "parallel"),   # no reduction axis
            vmem_limit_bytes=32 * 1024 * 1024),
    )(xm, w, b2)

    # TODO(synk): nn.Dropout(p=0.1) is identity in eval mode; training-mode dropout not implemented.
    return out[:M, :D].reshape(B, V, D)


# ----------------------------- reference (plain JAX) ------------------------------

def _reference(x, x_time, weight, bias, compute_dtype=jnp.float32):
    xp = jnp.transpose(x, (0, 2, 1)).astype(compute_dtype)            # (B, N, T)
    if x_time is not None:
        xp = jnp.concatenate(
            [xp, jnp.transpose(x_time, (0, 2, 1)).astype(compute_dtype)], axis=1)
    out = jnp.einsum('bvt,td->bvd', xp, weight.astype(compute_dtype),
                     preferred_element_type=jnp.float32)
    return out + bias.astype(jnp.float32)


# ----------------------------- main ------------------------------

if __name__ == "__main__":
    B, T, N, Fm, D = 2, 16, 4, 4, 32   # batch, seq_len (=c_in), variates, time feats, d_model

    key = jax.random.PRNGKey(0)
    kx, kt, kw, kb = jax.random.split(key, 4)
    x = jax.random.normal(kx, (B, T, N), jnp.float32)
    x_time = jax.random.normal(kt, (B, T, Fm), jnp.float32)
    weight = jax.random.normal(kw, (T, D), jnp.float32) * (1.0 / jnp.sqrt(T))
    bias = jax.random.normal(kb, (D,), jnp.float32) * 0.02

    fwd = jax.jit(variates_embedding)

    # branch with time marks (concat path)
    out_time = jax.block_until_ready(fwd(x, x_time, weight, bias))
    # branch without time marks
    out_none = jax.block_until_ready(fwd(x, None, weight, bias))

    assert out_time.shape == (B, N + Fm, D)
    assert out_none.shape == (B, N, D)

    # Check against a reference with matching bf16 input casts (tight tolerance) ...
    ref_time_bf = _reference(x, x_time, weight, bias, compute_dtype=jnp.bfloat16)
    ref_none_bf = _reference(x, None, weight, bias, compute_dtype=jnp.bfloat16)
    np.testing.assert_allclose(np.asarray(out_time), np.asarray(ref_time_bf),
                               rtol=5e-3, atol=5e-3)
    np.testing.assert_allclose(np.asarray(out_none), np.asarray(ref_none_bf),
                               rtol=5e-3, atol=5e-3)

    # ... and against the full-f32 reference (loose tolerance; bf16 inputs on the MXU).
    ref_time_f32 = _reference(x, x_time, weight, bias)
    ref_none_f32 = _reference(x, None, weight, bias)
    np.testing.assert_allclose(np.asarray(out_time), np.asarray(ref_time_f32),
                               rtol=1e-1, atol=1e-1)
    np.testing.assert_allclose(np.asarray(out_none), np.asarray(ref_none_f32),
                               rtol=1e-1, atol=1e-1)

    print("KERNEL_OK")
</pallas_src>

<mosaic_0001>
module attributes {stable_mosaic.version = 11 : i64} {
  func.func @_linear_bias_kernel(%arg0: i32, %arg1: i32, %arg2: memref<16x16xbf16, #tpu.memory_space<vmem>>, %arg3: memref<16x128xbf16, #tpu.memory_space<vmem>>, %arg4: memref<1x128xf32, #tpu.memory_space<vmem>>, %arg5: memref<16x128xf32, #tpu.memory_space<vmem>>) attributes {dimension_semantics = [#tpu.dimension_semantics<parallel>, #tpu.dimension_semantics<parallel>], iteration_bounds = array<i64: 1, 1>, scalar_prefetch = 0 : i64, scratch_operands = 0 : i64, tpu.core_type = #tpu.core_type<tc>, window_params = [{transform_indices = @transform_0, window_bounds = array<i64: 16, 16>}, {transform_indices = @transform_1, window_bounds = array<i64: 16, 128>}, {transform_indices = @transform_2, window_bounds = array<i64: 1, 128>}, {transform_indices = @transform_3, window_bounds = array<i64: 16, 128>}]} {
    %c0 = arith.constant 0 : index
    %c0_0 = arith.constant 0 : index
    %0 = vector.load %arg2[%c0, %c0_0] : memref<16x16xbf16, #tpu.memory_space<vmem>>, vector<16x16xbf16>
    %c0_1 = arith.constant 0 : index
    %c0_2 = arith.constant 0 : index
    %1 = vector.load %arg3[%c0_1, %c0_2] : memref<16x128xbf16, #tpu.memory_space<vmem>>, vector<16x128xbf16>
    %cst = arith.constant dense<0.000000e+00> : vector<16x128xf32>
    %2 = tpu.matmul %0, %1, %cst {dimension_numbers = #tpu.dot_dimension_numbers<[1], [0], [0], [1], [0, 0, 1, 1], [], []>} : vector<16x16xbf16>, vector<16x128xbf16>, vector<16x128xf32> -> vector<16x128xf32>
    %c0_3 = arith.constant 0 : index
    %c0_4 = arith.constant 0 : index
    %3 = vector.load %arg4[%c0_3, %c0_4] : memref<1x128xf32, #tpu.memory_space<vmem>>, vector<1x128xf32>
    %4 = vector.broadcast %3 : vector<1x128xf32> to vector<16x128xf32>
    %5 = arith.addf %2, %4 : vector<16x128xf32>
    %c0_5 = arith.constant 0 : index
    %c0_6 = arith.constant 0 : index
    %6 = vector.load %arg5[%c0_5, %c0_6] : memref<16x128xf32, #tpu.memory_space<vmem>>, vector<16x128xf32>
    tpu.vector_store %arg5[%c0_5, %c0_6], %5 {strides = array<i32>} : memref<16x128xf32, #tpu.memory_space<vmem>>, vector<16x128xf32>,
    return
  }
  func.func @transform_0(%arg0: i32, %arg1: i32) -> (i32, i32) {
    %c0_i32 = arith.constant 0 : i32
    %c0_i32_0 = arith.constant 0 : i32
    return %arg0, %c0_i32 : i32, i32
  }
  func.func @transform_1(%arg0: i32, %arg1: i32) -> (i32, i32) {
    %c0_i32 = arith.constant 0 : i32
    %c0_i32_0 = arith.constant 0 : i32
    return %c0_i32, %arg1 : i32, i32
  }
  func.func @transform_2(%arg0: i32, %arg1: i32) -> (i32, i32) {
    %c0_i32 = arith.constant 0 : i32
    %c0_i32_0 = arith.constant 0 : i32
    return %c0_i32, %arg1 : i32, i32
  }
  func.func @transform_3(%arg0: i32, %arg1: i32) -> (i32, i32) {
    %c0_i32 = arith.constant 0 : i32
    return %arg0, %arg1 : i32, i32
  }
}

</mosaic_0001>

<bundles_post_ra>
// kernel: variates_embedding.1
= control target key start
LH: loop header
LB: loop body
LE: loop exit
PB: predicated region body
PF: predicated region fallthrough
CT: control target
= control target key end

     0   :  { %v104_v0 = vmov 0.0   ;;  %vm105_vm0 = vmmov 0   ;;  %vm37_vm1 = vcmask 130048   ;;  %s141_s1 = inlined_call_operand.vmem [shape: bf16[16,128], index: 1, kind: input, shape index: {}]   ;;  %s142_s0 = inlined_call_operand.vmem [shape: bf16[16,16], index: 0, kind: input, shape index: {}]   ;;  %s143_s2 = inlined_call_operand.vmem [shape: f32[1,128], index: 2, kind: input, shape index: {}]   ;;  %s144_s3 = inlined_call_operand.vmem [shape: f32[16,128], index: 3, kind: output, shape index: {}]  }
   0x1   :  { %94 = vmatprep.subr.bf16.mxu0 %v104_v0  ;;  %v102_v1 = vld [vmem:[%s141_s1] sm:$0xff]   ;;  %96 = vmatprep.mubr.msk.bf16.mxu0 %vm105_vm0, %v104_v0 }
   0x2   :  { %v103_v2 = vld [vmem:[%s142_s0] sm:$0xff]   ;;  %95 = vmatpush3.bf16.msra.mxu0 %v102_v1 }
   0x3   :  { %v88_v3 = vld [vmem:[%s143_s2] ss:$0 sm:$0xff] }
   0x5   :  { %97 = vmatmul.mubr.msk.bf16.vlgmr.msra.gmra.mxu0 %vm37_vm1, %v103_v2 }
  0xc5   :  { %v75_v4 = vpop.f32.mrf.mxu0 }
  0xc6   :  { %v76_v5 = vadd.f32 %v88_v3, %v75_v4 }
  0xc7   :  { %v98_v6 = vpop.f32.mrf.mxu0 }
  0xc8   :  { %82 = vst [vmem:[%s144_s3] sm:$0xff] %v76_v5 }
  0xc9   :  { %v78_v7 = vpop.f32.mrf.mxu0 }
  0xca   :  { %v79_v8 = vadd.f32 %v88_v3, %v78_v7 }
  0xcb   :  { %v99_v9 = vpop.f32.mrf.mxu0 }
  0xcc   :  { %83 = vst [vmem:[%s144_s3 + $0x8] sm:$0xff] %v79_v8 }

</bundles_post_ra>
